<compile_context>
chip_gen: v6e
topology: v6e:2x2x1
jax: 0.10.0
libtpu: 0.0.40
codegen_flags: <defaults>
</compile_context>

<pallas_src>
import jax
import jax.numpy as jnp
from jax.experimental import pallas as pl
from jax.experimental.pallas import tpu as pltpu

_LANES = 128
_SUBLANES = 8
_TARGET_BLOCK_BYTES = 2 * 1024 * 1024  # ~2 MiB blocks: near-roofline, VMEM-safe on v7x


def model_forward(x, out=1):
    """Pallas equivalent of Model.forward: returns x + (out + 2)."""
    offset = out + 2  # Python scalar at trace time -> closure constant in the kernel

    orig_shape = x.shape
    dtype = x.dtype
    total = x.size
    if total == 0:
        return x

    x_flat = x.reshape(-1)

    # Rare fallback: only pad (extra HBM copy) when total is not a multiple of 128.
    pad = (-total) % _LANES
    if pad:
        x_flat = jnp.concatenate([x_flat, jnp.zeros((pad,), dtype=dtype)])
    padded = total + pad

    # Lane-dense slab: widest last dim (multiple of 128) that divides the total.
    width = _LANES
    for w in (4096, 2048, 1024, 512, 256, 128):
        if padded % w == 0:
            width = w
            break
    rows = padded // width
    x2d = x_flat.reshape(rows, width)

    itemsize = jnp.dtype(dtype).itemsize
    if rows <= _SUBLANES:
        # Tiny slab: one block covering the full sublane extent.
        tile_rows = rows
    else:
        # Fixed large tile (~2 MiB), rounded to a multiple of 8 sublanes.
        target_rows = max(
            _SUBLANES,
            (_TARGET_BLOCK_BYTES // (width * itemsize)) // _SUBLANES * _SUBLANES,
        )
        tile_rows = min(target_rows, (rows // _SUBLANES) * _SUBLANES)
        # v7x megacore: make sure there are >= 2 parallel grid steps when possible.
        if rows >= 2 * _SUBLANES:
            half_rows = max(_SUBLANES, (((rows + 1) // 2) // _SUBLANES) * _SUBLANES)
            tile_rows = min(tile_rows, half_rows)

    grid = (pl.cdiv(rows, tile_rows),)  # ragged last block handled by Pallas

    def kernel(x_ref, o_ref):
        o_ref[...] = x_ref[...] + jnp.asarray(offset, dtype=o_ref.dtype)

    y2d = pl.pallas_call(
        kernel,
        out_shape=jax.ShapeDtypeStruct((rows, width), dtype),
        grid=grid,
        in_specs=[pl.BlockSpec((tile_rows, width), lambda i: (i, 0))],
        out_specs=pl.BlockSpec((tile_rows, width), lambda i: (i, 0)),
        compiler_params=pltpu.CompilerParams(
            dimension_semantics=("parallel",),
        ),
    )(x2d)

    y_flat = y2d.reshape(-1)
    if pad:
        y_flat = y_flat[:total]
    return y_flat.reshape(orig_shape)


if __name__ == "__main__":
    key = jax.random.PRNGKey(0)

    # Small NCHW input consistent with the module.
    x_small = jax.random.normal(key, (2, 4, 16, 16), dtype=jnp.float32)
    y_small = model_forward(x_small, out=1)
    jax.block_until_ready(y_small)
    assert y_small.shape == x_small.shape and y_small.dtype == x_small.dtype
    assert bool(jnp.allclose(y_small, x_small + 3.0, atol=1e-6, rtol=1e-6))

    # Spec-shaped input (3, 3, 64, 64): exercises the multi-step ragged grid path.
    x_spec = jax.random.normal(jax.random.PRNGKey(1), (3, 3, 64, 64), dtype=jnp.float32)
    y_spec = model_forward(x_spec, out=1)
    jax.block_until_ready(y_spec)
    assert bool(jnp.allclose(y_spec, x_spec + 3.0, atol=1e-6, rtol=1e-6))

    # Odd element count (not a multiple of 128): exercises the pad fallback path.
    x_odd = jax.random.normal(jax.random.PRNGKey(2), (5, 7, 3), dtype=jnp.float32)
    y_odd = model_forward(x_odd, out=1)
    jax.block_until_ready(y_odd)
    assert bool(jnp.allclose(y_odd, x_odd + 3.0, atol=1e-6, rtol=1e-6))

    print("KERNEL_OK")
</pallas_src>

<mosaic_0001>
module attributes {stable_mosaic.version = 11 : i64} {
  func.func @kernel(%arg0: i32, %arg1: memref<1x2048xf32, #tpu.memory_space<vmem>>, %arg2: memref<1x2048xf32, #tpu.memory_space<vmem>>) attributes {dimension_semantics = [#tpu.dimension_semantics<parallel>], iteration_bounds = array<i64: 1>, scalar_prefetch = 0 : i64, scratch_operands = 0 : i64, tpu.core_type = #tpu.core_type<tc>, window_params = [{transform_indices = @transform_0, window_bounds = array<i64: 1, 2048>}, {transform_indices = @transform_1, window_bounds = array<i64: 1, 2048>}]} {
    %c0 = arith.constant 0 : index
    %c0_0 = arith.constant 0 : index
    %0 = vector.load %arg1[%c0, %c0_0] : memref<1x2048xf32, #tpu.memory_space<vmem>>, vector<1x2048xf32>
    %cst = arith.constant 3.000000e+00 : f32
    %1 = vector.broadcast %cst : f32 to vector<1x2048xf32>
    %2 = arith.addf %0, %1 : vector<1x2048xf32>
    %c0_1 = arith.constant 0 : index
    %c0_2 = arith.constant 0 : index
    %3 = vector.load %arg2[%c0_1, %c0_2] : memref<1x2048xf32, #tpu.memory_space<vmem>>, vector<1x2048xf32>
    tpu.vector_store %arg2[%c0_1, %c0_2], %2 {strides = array<i32>} : memref<1x2048xf32, #tpu.memory_space<vmem>>, vector<1x2048xf32>,
    return
  }
  func.func @transform_0(%arg0: i32) -> (i32, i32) {
    %c0_i32 = arith.constant 0 : i32
    %c0_i32_0 = arith.constant 0 : i32
    return %arg0, %c0_i32 : i32, i32
  }
  func.func @transform_1(%arg0: i32) -> (i32, i32) {
    %c0_i32 = arith.constant 0 : i32
    %c0_i32_0 = arith.constant 0 : i32
    return %arg0, %c0_i32 : i32, i32
  }
}

</mosaic_0001>

<bundles_post_ra>
// kernel: tpu_custom_call.1
= control target key start
LH: loop header
LB: loop body
LE: loop exit
PB: predicated region body
PF: predicated region fallthrough
CT: control target
= control target key end

     0   :  { %6 = vsyncpa [#allocation3], 0  ;;  %s106_s0 = inlined_call_operand.hbm [shape: f32[1,2048], index: 0, kind: input, shape index: {}]   ;;  %s107_s1 = inlined_call_operand.hbm [shape: f32[1,2048], index: 1, kind: output, shape index: {}]  }
   0x1   :  { %7 = vsyncpa [#allocation4], 0  ;;  %s88_s6 = smov [#allocation2]  }
   0x2   :  { %s14_s7 = sshll.u32 %s88_s6, 4  ;;  %s15_s7 = int_to_ptr.vmem [resolvable:$true] %s14_s7 }
   0x3   :  { %s52_s8 = scalar_lea.vmem %s15_s7, 256  ;;  %p57_p1 = scmp.lt.s32.totalorder %s15_s7, %s15_s7 }
   0x4   :  { %p53_p0 = scmp.ne.s32.totalorder %s15_s7, %s52_s8  ;;  %p58_p2 = scmp.lt.s32.totalorder %s52_s8, %s52_s8 }
   0x6   :  { %p59_p3 = por %p58_p2, %p57_p1 }
   0x8   :  { %p60_p4 = pnand %p59_p3, %p53_p0 }
   0xa   :  { %63 = shalt.err (!%p60_p4)
}
   0xb   :  { %17 = dma.hbm_to_vmem [thread:$0]  %s106_s0, 256, %s15_s7, [#allocation3]  }
   0xc   :  { %84 = dma.done.wait [#allocation3], 256  }
   0xd   :  { %85 = vsyncadd [#allocation3], 4294967040  ;;  %s89_s11 = smov [#allocation5]   ;;  %v21_v0 = vld [vmem:[#allocation2] sm:$0xff]  ;;  %v22_v1 = vld [vmem:[#allocation2 + $0x8] sm:$0xff] }
   0xe   :  { %s33_s12 = sshll.u32 %s89_s11, 4  ;;  %v23_v2 = vadd.f32 3.0, %v21_v0  ;;  %v24_v3 = vadd.f32 3.0, %v22_v1  ;;  %s34_s12 = int_to_ptr.vmem [resolvable:$true] %s33_s12 }
   0xf   :  { %s64_s13 = scalar_lea.vmem %s34_s12, 256  ;;  %p69_p6 = scmp.lt.s32.totalorder %s34_s12, %s34_s12 }
  0x10   :  { %25 = vst [vmem:[#allocation5] sm:$0xff] %v23_v2  ;;  %26 = vst [vmem:[#allocation5 + $0x8] sm:$0xff] %v24_v3  ;;  %p65_p5 = scmp.ne.s32.totalorder %s34_s12, %s64_s13  ;;  %p70_p7 = scmp.lt.s32.totalorder %s64_s13, %s64_s13 }
  0x12   :  { %p71_p8 = por %p70_p7, %p69_p6 }
  0x14   :  { %p72_p9 = pnand %p71_p8, %p65_p5 }
  0x16   :  { %75 = shalt.err (!%p72_p9)
}
  0x17   :  { %36 = dma.vmem_to_hbm [thread:$0]  %s34_s12, 256, %s107_s1, [#allocation4]  }
  0x18   :  { %86 = dma.done.wait [#allocation4], 256  }
  0x19   :  { %87 = vsyncadd [#allocation4], 4294967040 }
  0x1a   :  { %40 = vsyncpa [#allocation3], 1 }
  0x1b   :  { %41 = vsyncpa [#allocation4], 1 }

</bundles_post_ra>
